<compile_context>
chip_gen: v7x
topology: tpu7x:2x2x1
jax: 0.10.0
libtpu: 0.0.40
codegen_flags: <defaults>
</compile_context>

<pallas_src>
import functools

import jax
import jax.numpy as jnp
from jax import lax
from jax.experimental import pallas as pl
from jax.experimental.pallas import tpu as pltpu

_LANE = 128
_SUBLANE = 8


def _round_up(x, m):
    return ((x + m - 1) // m) * m


def _pick_tiles(n, v, itemsize, *, row_tile=None, vocab_tile=None,
                vmem_budget_bytes=20 * 1024 * 1024):
    """Pick (row_tile, vocab_tile) so the working set fills (but fits) VMEM."""
    # Vocab (lane) tile: whole vocab if small enough, otherwise a lane-aligned
    # chunk; the online-softmax reduction handles the cross-chunk combine.
    if vocab_tile is None:
        vocab_tile = v if v <= 16384 else 16384
    vocab_tile = min(vocab_tile, v)
    if vocab_tile < v:
        vocab_tile = max(_LANE, (vocab_tile // _LANE) * _LANE)

    if row_tile is None:
        # Approx bytes of VMEM held live per token row:
        #   2x (double-buffered) input chunk + f32 working copies + misc.
        per_row = 2 * vocab_tile * itemsize + 8 * vocab_tile + 4096
        row_tile = vmem_budget_bytes // per_row
    row_tile = max(_SUBLANE, (int(row_tile) // _SUBLANE) * _SUBLANE)
    row_tile = min(row_tile, 1024, _round_up(n, _SUBLANE))
    return int(row_tile), int(vocab_tile)


def _lsce_kernel(tgt_ref, x_ref, out_ref, m_ref, l_ref, ws_ref, *,
                 label_smoothing, ignore_index, n_rows, vocab,
                 row_tile, vocab_tile):
    i = pl.program_id(0)           # row-tile index   ("parallel")
    j = pl.program_id(1)           # vocab-tile index ("arbitrary", reduction)
    nj = pl.num_programs(1)

    # ---- per-row accumulators, reset at the start of each vocab sweep ----
    @pl.when(j == 0)
    def _():
        m_ref[...] = jnp.full(m_ref.shape, -jnp.inf, jnp.float32)
        l_ref[...] = jnp.zeros_like(l_ref)
        ws_ref[...] = jnp.zeros_like(ws_ref)

    x = x_ref[...].astype(jnp.float32)       # (T, TV) logits chunk
    tgt = tgt_ref[...]                       # (T, 1) int32 targets

    # Fold the final loss coefficients into a per-column weight so that
    #   c1 * x[tgt] + c2 * sum_v(x) == sum_v(x * (c2 + c1 * onehot))
    # costs a single lane reduction instead of two.
    c2 = label_smoothing / (vocab - 1)            # eps_i
    c1 = 1.0 - label_smoothing - c2               # (1 - ls - eps_i)

    col = j * vocab_tile + lax.broadcasted_iota(jnp.int32, x.shape, 1)
    w = jnp.where(col == tgt, c1 + c2, c2)        # (T, TV) f32 weights

    if vocab % vocab_tile != 0:                   # static: mask padded columns
        col_ok = col < vocab
        x_max = jnp.where(col_ok, x, -jnp.inf)    # drives max / exp
        x_sum = jnp.where(col_ok, x, 0.0)         # drives weighted sum
    else:
        x_max = x
        x_sum = x

    # ---- online softmax pieces across the vocab grid axis ----
    m_old = m_ref[...]
    m_new = jnp.maximum(m_old, jnp.max(x_max, axis=-1, keepdims=True))
    l_ref[...] = (jnp.exp(m_old - m_new) * l_ref[...]
                  + jnp.sum(jnp.exp(x_max - m_new), axis=-1, keepdims=True))
    m_ref[...] = m_new
    ws_ref[...] += jnp.sum(x_sum * w, axis=-1, keepdims=True)

    # ---- finalize this row tile after the last vocab chunk ----
    @pl.when(j == nj - 1)
    def _():
        lse = m_ref[...] + jnp.log(l_ref[...])                    # (T, 1)
        # c1 * nll_row + c2 * smooth_row == (c1 + V*c2) * lse - ws
        loss_rows = (c1 + vocab * c2) * lse - ws_ref[...]

        row_ids = i * row_tile + lax.broadcasted_iota(jnp.int32, tgt.shape, 0)
        in_range = row_ids < n_rows                               # mask padded rows
        if ignore_index is not None:
            is_pad = jnp.logical_and(in_range, tgt == ignore_index)
        else:
            is_pad = jnp.zeros_like(in_range)
        keep = jnp.logical_and(in_range, jnp.logical_not(is_pad))

        fused_sum = jnp.sum(jnp.where(keep, loss_rows, 0.0))
        pad_cnt = jnp.sum(is_pad.astype(jnp.float32))

        lane = lax.broadcasted_iota(jnp.int32, (1, 1, _LANE), 2)
        out_ref[...] = jnp.where(lane == 0, fused_sum,
                                 jnp.where(lane == 1, pad_cnt, 0.0))


def label_smoothed_cross_entropy(net_output, target, *,
                                 label_smoothing=0.0, ignore_index=None,
                                 row_tile=None, vocab_tile=None):
    """Forward pass of LabelSmoothedCrossEntropy with reduce=True.

    net_output: (N, V) float logits (f32 or bf16 — consumed as-is, never
    pre-cast).  target: (N,) integer class indices.  Returns scalar f32 loss.
    """
    n, v = net_output.shape
    itemsize = jnp.dtype(net_output.dtype).itemsize
    row_tile, vocab_tile = _pick_tiles(n, v, itemsize,
                                       row_tile=row_tile, vocab_tile=vocab_tile)
    num_row_tiles = pl.cdiv(n, row_tile)
    num_vocab_tiles = pl.cdiv(v, vocab_tile)

    tgt2d = target.astype(jnp.int32).reshape(n, 1)

    kernel = functools.partial(
        _lsce_kernel,
        label_smoothing=float(label_smoothing),
        ignore_index=ignore_index,
        n_rows=n, vocab=v,
        row_tile=row_tile, vocab_tile=vocab_tile,
    )

    partials = pl.pallas_call(
        kernel,
        out_shape=jax.ShapeDtypeStruct((num_row_tiles, 1, _LANE), jnp.float32),
        grid_spec=pltpu.PrefetchScalarGridSpec(
            num_scalar_prefetch=0,
            grid=(num_row_tiles, num_vocab_tiles),
            in_specs=[
                pl.BlockSpec((row_tile, 1), lambda i, j: (i, 0)),           # targets
                pl.BlockSpec((row_tile, vocab_tile), lambda i, j: (i, j)),  # logits
            ],
            out_specs=pl.BlockSpec((1, 1, _LANE), lambda i, j: (i, 0, 0)),  # partials
            scratch_shapes=[pltpu.VMEM((row_tile, 1), jnp.float32)] * 3,
        ),
        compiler_params=pltpu.CompilerParams(
            dimension_semantics=("parallel", "arbitrary"),
            vmem_limit_bytes=48 * 1024 * 1024,
        ),
    )(tgt2d, net_output)

    fused_sum = jnp.sum(partials[:, 0, 0])
    pad_cnt = jnp.sum(partials[:, 0, 1])
    # Unguarded like the reference: all-pad batch yields inf/nan.
    non_pad = jnp.float32(n) - pad_cnt
    return fused_sum / non_pad
    # TODO(synk): reduce=False (per-token unreduced loss) path is not implemented.


def _reference(net_output, target, label_smoothing, ignore_index):
    lp = jax.nn.log_softmax(net_output.astype(jnp.float32), axis=-1)
    nll = -jnp.take_along_axis(lp, target[:, None], axis=-1)[:, 0]
    smooth = -jnp.sum(lp, axis=-1)
    if ignore_index is not None:
        pad = target == ignore_index
        nll = jnp.where(pad, 0.0, nll)
        smooth = jnp.where(pad, 0.0, smooth)
        non_pad = net_output.shape[0] - jnp.sum(pad)
    else:
        non_pad = net_output.shape[0]
    nll_l = jnp.sum(nll) / non_pad
    sm_l = jnp.sum(smooth) / non_pad
    eps_i = label_smoothing / (net_output.shape[-1] - 1)
    return (1.0 - label_smoothing - eps_i) * nll_l + eps_i * sm_l


if __name__ == "__main__":
    key = jax.random.PRNGKey(0)
    k1, k2, k3, k4 = jax.random.split(key, 4)
    ls = 0.1

    # Case 1: batch=2, seq=8 -> 16 tokens, vocab=128, pad class 0; auto tiles.
    N1, V1, pad_idx = 16, 128, 0
    logits1 = jax.random.normal(k1, (N1, V1), dtype=jnp.float32)
    tgt1 = jax.random.randint(k2, (N1,), 0, V1, dtype=jnp.int32)
    tgt1 = tgt1.at[3].set(pad_idx).at[11].set(pad_idx)
    loss1 = jax.block_until_ready(label_smoothed_cross_entropy(
        logits1, tgt1, label_smoothing=ls, ignore_index=pad_idx))
    ref1 = _reference(logits1, tgt1, ls, pad_idx)
    assert jnp.allclose(loss1, ref1, rtol=1e-5, atol=1e-5), (loss1, ref1)

    # Case 2: N not a multiple of the row tile (row masking), vocab not a
    # multiple of the vocab tile (column masking + online softmax across
    # chunks), no ignore_index, multi-tile partial outputs.
    N2, V2 = 20, 320
    logits2 = jax.random.normal(k3, (N2, V2), dtype=jnp.float32)
    tgt2 = jax.random.randint(k4, (N2,), 0, V2, dtype=jnp.int32)
    loss2 = jax.block_until_ready(label_smoothed_cross_entropy(
        logits2, tgt2, label_smoothing=ls, ignore_index=None,
        row_tile=8, vocab_tile=128))
    ref2 = _reference(logits2, tgt2, ls, None)
    assert jnp.allclose(loss2, ref2, rtol=1e-5, atol=1e-5), (loss2, ref2)

    print("KERNEL_OK")
</pallas_src>

<mosaic_0001>
module attributes {stable_mosaic.version = 11 : i64} {
  func.func @_lsce_kernel(%arg0: i32, %arg1: i32, %arg2: memref<16x1xi32, #tpu.memory_space<vmem>>, %arg3: memref<16x128xf32, #tpu.memory_space<vmem>>, %arg4: memref<1x1x128xf32, #tpu.memory_space<vmem>>, %arg5: memref<16x1xf32, #tpu.memory_space<vmem>>, %arg6: memref<16x1xf32, #tpu.memory_space<vmem>>, %arg7: memref<16x1xf32, #tpu.memory_space<vmem>>) attributes {dimension_semantics = [#tpu.dimension_semantics<parallel>, #tpu.dimension_semantics<arbitrary>], iteration_bounds = array<i64: 1, 1>, scalar_prefetch = 0 : i64, scratch_operands = 3 : i64, tpu.core_type = #tpu.core_type<tc>, window_params = [{transform_indices = @transform_0, window_bounds = array<i64: 16, 1>}, {transform_indices = @transform_1, window_bounds = array<i64: 16, 128>}, {transform_indices = @transform_2, window_bounds = array<i64: 1, 1, 128>}]} {
    %c0_i32 = arith.constant 0 : i32
    %0 = arith.cmpi eq, %arg1, %c0_i32 : i32
    %1 = arith.extui %0 : i1 to i32
    %c0_i32_0 = arith.constant 0 : i32
    %2 = arith.cmpi ne, %1, %c0_i32_0 : i32
    scf.if %2 {
      %cst_22 = arith.constant 0xFF800000 : f32
      %39 = vector.broadcast %cst_22 : f32 to vector<16x1xf32>
      %c0_23 = arith.constant 0 : index
      %c0_24 = arith.constant 0 : index
      %40 = vector.load %arg5[%c0_23, %c0_24] : memref<16x1xf32, #tpu.memory_space<vmem>>, vector<16x1xf32>
      tpu.vector_store %arg5[%c0_23, %c0_24], %39 {strides = array<i32>} : memref<16x1xf32, #tpu.memory_space<vmem>>, vector<16x1xf32>,
      %cst_25 = arith.constant 0.000000e+00 : f32
      %41 = vector.broadcast %cst_25 : f32 to vector<16x1xf32>
      %c0_26 = arith.constant 0 : index
      %c0_27 = arith.constant 0 : index
      %42 = vector.load %arg6[%c0_26, %c0_27] : memref<16x1xf32, #tpu.memory_space<vmem>>, vector<16x1xf32>
      tpu.vector_store %arg6[%c0_26, %c0_27], %41 {strides = array<i32>} : memref<16x1xf32, #tpu.memory_space<vmem>>, vector<16x1xf32>,
      %cst_28 = arith.constant 0.000000e+00 : f32
      %43 = vector.broadcast %cst_28 : f32 to vector<16x1xf32>
      %c0_29 = arith.constant 0 : index
      %c0_30 = arith.constant 0 : index
      %44 = vector.load %arg7[%c0_29, %c0_30] : memref<16x1xf32, #tpu.memory_space<vmem>>, vector<16x1xf32>
      tpu.vector_store %arg7[%c0_29, %c0_30], %43 {strides = array<i32>} : memref<16x1xf32, #tpu.memory_space<vmem>>, vector<16x1xf32>,
    } else {
    }
    %c0 = arith.constant 0 : index
    %c0_1 = arith.constant 0 : index
    %3 = vector.load %arg3[%c0, %c0_1] : memref<16x128xf32, #tpu.memory_space<vmem>>, vector<16x128xf32>
    %c0_2 = arith.constant 0 : index
    %c0_3 = arith.constant 0 : index
    %4 = vector.load %arg2[%c0_2, %c0_3] : memref<16x1xi32, #tpu.memory_space<vmem>>, vector<16x1xi32>
    %c128_i32 = arith.constant 128 : i32
    %5 = arith.muli %arg1, %c128_i32 : i32
    %6 = tpu.iota {dimensions = array<i32: 1>} : vector<16x128xi32>
    %7 = vector.broadcast %5 : i32 to vector<16x128xi32>
    %8 = arith.addi %7, %6 : vector<16x128xi32>
    %9 = vector.broadcast %4 : vector<16x1xi32> to vector<16x128xi32>
    %10 = arith.cmpi eq, %8, %9 : vector<16x128xi32>
    %cst = arith.constant 0.899999976 : f32
    %cst_4 = arith.constant 7.87401571E-4 : f32
    %11 = vector.broadcast %cst : f32 to vector<16x128xf32>
    %12 = vector.broadcast %cst_4 : f32 to vector<16x128xf32>
    %13 = arith.select %10, %11, %12 : vector<16x128xi1>, vector<16x128xf32>
    %c0_5 = arith.constant 0 : index
    %c0_6 = arith.constant 0 : index
    %14 = vector.load %arg5[%c0_5, %c0_6] : memref<16x1xf32, #tpu.memory_space<vmem>>, vector<16x1xf32>
    %cst_7 = arith.constant dense<0xFF800000> : vector<16xf32>
    %15 = vector.multi_reduction <maximumf>, %3, %cst_7 [1] : vector<16x128xf32> to vector<16xf32>
    %16 = vector.shape_cast %15 : vector<16xf32> to vector<16x1xf32>
    %17 = arith.maximumf %14, %16 : vector<16x1xf32>
    %18 = arith.subf %14, %17 : vector<16x1xf32>
    %19 = math.exp %18 : vector<16x1xf32>
    %c0_8 = arith.constant 0 : index
    %c0_9 = arith.constant 0 : index
    %20 = vector.load %arg6[%c0_8, %c0_9] : memref<16x1xf32, #tpu.memory_space<vmem>>, vector<16x1xf32>
    %21 = arith.mulf %19, %20 : vector<16x1xf32>
    %22 = vector.broadcast %17 : vector<16x1xf32> to vector<16x128xf32>
    %23 = arith.subf %3, %22 : vector<16x128xf32>
    %24 = math.exp %23 : vector<16x128xf32>
    %cst_10 = arith.constant dense<0.000000e+00> : vector<16xf32>
    %25 = vector.multi_reduction <add>, %24, %cst_10 [1] : vector<16x128xf32> to vector<16xf32>
    %26 = vector.shape_cast %25 : vector<16xf32> to vector<16x1xf32>
    %27 = arith.addf %21, %26 : vector<16x1xf32>
    %c0_11 = arith.constant 0 : index
    %c0_12 = arith.constant 0 : index
    %28 = vector.load %arg6[%c0_11, %c0_12] : memref<16x1xf32, #tpu.memory_space<vmem>>, vector<16x1xf32>
    tpu.vector_store %arg6[%c0_11, %c0_12], %27 {strides = array<i32>} : memref<16x1xf32, #tpu.memory_space<vmem>>, vector<16x1xf32>,
    %c0_13 = arith.constant 0 : index
    %c0_14 = arith.constant 0 : index
    %29 = vector.load %arg5[%c0_13, %c0_14] : memref<16x1xf32, #tpu.memory_space<vmem>>, vector<16x1xf32>
    tpu.vector_store %arg5[%c0_13, %c0_14], %17 {strides = array<i32>} : memref<16x1xf32, #tpu.memory_space<vmem>>, vector<16x1xf32>,
    %c0_15 = arith.constant 0 : index
    %c0_16 = arith.constant 0 : index
    %30 = vector.load %arg7[%c0_15, %c0_16] : memref<16x1xf32, #tpu.memory_space<vmem>>, vector<16x1xf32>
    %31 = arith.mulf %3, %13 : vector<16x128xf32>
    %cst_17 = arith.constant dense<0.000000e+00> : vector<16xf32>
    %32 = vector.multi_reduction <add>, %31, %cst_17 [1] : vector<16x128xf32> to vector<16xf32>
    %33 = vector.shape_cast %32 : vector<16xf32> to vector<16x1xf32>
    %34 = arith.addf %30, %33 : vector<16x1xf32>
    %c0_18 = arith.constant 0 : index
    %c0_19 = arith.constant 0 : index
    %35 = vector.load %arg7[%c0_18, %c0_19] : memref<16x1xf32, #tpu.memory_space<vmem>>, vector<16x1xf32>
    tpu.vector_store %arg7[%c0_18, %c0_19], %34 {strides = array<i32>} : memref<16x1xf32, #tpu.memory_space<vmem>>, vector<16x1xf32>,
    %c0_i32_20 = arith.constant 0 : i32
    %36 = arith.cmpi eq, %arg1, %c0_i32_20 : i32
    %37 = arith.extui %36 : i1 to i32
    %c0_i32_21 = arith.constant 0 : i32
    %38 = arith.cmpi ne, %37, %c0_i32_21 : i32
    scf.if %38 {
      %c0_22 = arith.constant 0 : index
      %c0_23 = arith.constant 0 : index
      %39 = vector.load %arg5[%c0_22, %c0_23] : memref<16x1xf32, #tpu.memory_space<vmem>>, vector<16x1xf32>
      %c0_24 = arith.constant 0 : index
      %c0_25 = arith.constant 0 : index
      %40 = vector.load %arg6[%c0_24, %c0_25] : memref<16x1xf32, #tpu.memory_space<vmem>>, vector<16x1xf32>
      %41 = math.log %40 : vector<16x1xf32>
      %42 = arith.addf %39, %41 : vector<16x1xf32>
      %cst_26 = arith.constant 1.000000e+00 : f32
      %43 = vector.broadcast %cst_26 : f32 to vector<16x1xf32>
      %44 = arith.mulf %43, %42 : vector<16x1xf32>
      %c0_27 = arith.constant 0 : index
      %c0_28 = arith.constant 0 : index
      %45 = vector.load %arg7[%c0_27, %c0_28] : memref<16x1xf32, #tpu.memory_space<vmem>>, vector<16x1xf32>
      %46 = arith.subf %44, %45 : vector<16x1xf32>
      %c16_i32 = arith.constant 16 : i32
      %47 = arith.muli %arg0, %c16_i32 : i32
      %48 = tpu.iota {dimensions = array<i32: 0>} : vector<16x1xi32>
      %49 = vector.broadcast %47 : i32 to vector<16x1xi32>
      %50 = arith.addi %49, %48 : vector<16x1xi32>
      %c16_i32_29 = arith.constant 16 : i32
      %51 = vector.broadcast %c16_i32_29 : i32 to vector<16x1xi32>
      %52 = arith.cmpi slt, %50, %51 : vector<16x1xi32>
      %c0_i32_30 = arith.constant 0 : i32
      %53 = vector.broadcast %c0_i32_30 : i32 to vector<16x1xi32>
      %54 = arith.cmpi eq, %4, %53 : vector<16x1xi32>
      %55 = arith.andi %52, %54 : vector<16x1xi1>
      %cst_31 = arith.constant dense<true> : vector<16x1xi1>
      %56 = arith.xori %55, %cst_31 : vector<16x1xi1>
      %57 = arith.andi %52, %56 : vector<16x1xi1>
      %cst_32 = arith.constant 0.000000e+00 : f32
      %58 = vector.broadcast %cst_32 : f32 to vector<16x1xf32>
      %59 = arith.select %57, %46, %58 : vector<16x1xi1>, vector<16x1xf32>
      %60 = vector.shape_cast %59 : vector<16x1xf32> to vector<1x16x1xf32>
      %cst_33 = arith.constant dense<0.000000e+00> : vector<1xf32>
      %61 = vector.multi_reduction <add>, %60, %cst_33 [1, 2] : vector<1x16x1xf32> to vector<1xf32>
      %62 = vector.shape_cast %61 : vector<1xf32> to vector<1x1x1xf32>
      %63 = vector.extract %62[0, 0, 0] : f32 from vector<1x1x1xf32>
      %64 = arith.extui %55 : vector<16x1xi1> to vector<16x1xi32>
      %65 = arith.sitofp %64 : vector<16x1xi32> to vector<16x1xf32>
      %66 = vector.shape_cast %65 : vector<16x1xf32> to vector<1x16x1xf32>
      %cst_34 = arith.constant dense<0.000000e+00> : vector<1xf32>
      %67 = vector.multi_reduction <add>, %66, %cst_34 [1, 2] : vector<1x16x1xf32> to vector<1xf32>
      %68 = vector.shape_cast %67 : vector<1xf32> to vector<1x1x1xf32>
      %69 = vector.extract %68[0, 0, 0] : f32 from vector<1x1x1xf32>
      %70 = tpu.iota {dimensions = array<i32: 2>} : vector<1x1x128xi32>
      %c0_i32_35 = arith.constant 0 : i32
      %71 = vector.broadcast %c0_i32_35 : i32 to vector<1x1x128xi32>
      %72 = arith.cmpi eq, %70, %71 : vector<1x1x128xi32>
      %c1_i32 = arith.constant 1 : i32
      %73 = vector.broadcast %c1_i32 : i32 to vector<1x1x128xi32>
      %74 = arith.cmpi eq, %70, %73 : vector<1x1x128xi32>
      %cst_36 = arith.constant 0.000000e+00 : f32
      %75 = vector.broadcast %69 : f32 to vector<1x1x128xf32>
      %76 = vector.broadcast %cst_36 : f32 to vector<1x1x128xf32>
      %77 = arith.select %74, %75, %76 : vector<1x1x128xi1>, vector<1x1x128xf32>
      %78 = vector.broadcast %63 : f32 to vector<1x1x128xf32>
      %79 = arith.select %72, %78, %77 : vector<1x1x128xi1>, vector<1x1x128xf32>
      %c0_37 = arith.constant 0 : index
      %c0_38 = arith.constant 0 : index
      %c0_39 = arith.constant 0 : index
      %80 = vector.load %arg4[%c0_37, %c0_38, %c0_39] : memref<1x1x128xf32, #tpu.memory_space<vmem>>, vector<1x1x128xf32>
      tpu.vector_store %arg4[%c0_37, %c0_38, %c0_39], %79 {strides = array<i32>} : memref<1x1x128xf32, #tpu.memory_space<vmem>>, vector<1x1x128xf32>,
    } else {
    }
    return
  }
  func.func @transform_0(%arg0: i32, %arg1: i32) -> (i32, i32) {
    %c0_i32 = arith.constant 0 : i32
    %c0_i32_0 = arith.constant 0 : i32
    return %arg0, %c0_i32 : i32, i32
  }
  func.func @transform_1(%arg0: i32, %arg1: i32) -> (i32, i32) {
    %c0_i32 = arith.constant 0 : i32
    return %arg0, %arg1 : i32, i32
  }
  func.func @transform_2(%arg0: i32, %arg1: i32) -> (i32, i32, i32) {
    %c0_i32 = arith.constant 0 : i32
    %c0_i32_0 = arith.constant 0 : i32
    %c0_i32_1 = arith.constant 0 : i32
    return %arg0, %c0_i32, %c0_i32_0 : i32, i32, i32
  }
}

</mosaic_0001>

<bundles_post_ra>
// kernel: tpu_custom_call.1
= control target key start
LH: loop header
LB: loop body
LE: loop exit
PB: predicated region body
PF: predicated region fallthrough
CT: control target
= control target key end

     0   :  { %s315_s0 = inlined_call_operand.vmem [shape: s32[16,1], index: 0, kind: input, shape index: {}]   ;;  %s316_s1 = inlined_call_operand.vmem [shape: f32[16,128], index: 1, kind: input, shape index: {}]   ;;  %s317_s2 = inlined_call_operand.hbm [shape: f32[1,1,128], index: 2, kind: output, shape index: {}]  }
   0x1   :  { %v23_v0 = vld [vmem:[%s316_s1] sm:$0xff] }
   0x2   :  { %7 = vsyncpa [#allocation6], 0  ;;  %44 = vmax.xlane.f32.xlu0 %v23_v0  ;;  %v24_v1 = vld [vmem:[%s316_s1 + $0x8] sm:$0xff]  ;;  %vm16_vm0 = vcmask 7168   ;;  %v234_v2 = vmov -inf   ;;  %v235_v3 = vmov 0   ;;  %v28_v15 = vlaneseq }
   0x3   :  { %17 = vst.msk [vmem:[#allocation2] sm:$0xff] %vm16_vm0, %v234_v2  ;;  %18 = vst.msk [vmem:[#allocation2 + $0x8] sm:$0xff] %vm16_vm0, %v234_v2  ;;  %196 = vset.pattern.permute.xlu1 %v235_v3  ;;  %197 = vset.pattern.permute.xlu0 %v235_v3  ;;  %v236_v4 = vmov 0.0   ;;  %v274_v5 = vld [vmem:[%s315_s0] sm:$0xff]  ;;  %v282_v14 = vld [vmem:[%s315_s0 + $0x8] sm:$0xff]  ;;  %vm238_vm5 = vmmov 1  }
   0x4   :  { %19 = vst.msk [vmem:[#allocation3] sm:$0xff] %vm16_vm0, %v236_v4  ;;  %20 = vst.msk [vmem:[#allocation3 + $0x8] sm:$0xff] %vm16_vm0, %v236_v4  ;;  %v285_v16 = vand.u32 127, %v28_v15  ;;  %v237_v18 = vmov 0.0007874016   ;;  %vm125_vm3 = vcmp.eq.s32.totalorder %v274_v5, 0 }
   0x5   :  { %21 = vst.msk [vmem:[#allocation4] sm:$0xff] %vm16_vm0, %v236_v4  ;;  %22 = vst.msk [vmem:[#allocation4 + $0x8] sm:$0xff] %vm16_vm0, %v236_v4  ;;  %vm126_vm4 = vcmp.eq.s32.totalorder %v282_v14, 0  ;;  %s239_s16 = smov [#allocation5]  }
   0x6   :  { %46 = vmax.xlane.f32.xlu0 %v24_v1  ;;  %vm129_vm6 = vmxor %vm125_vm3, %vm238_vm5  ;;  %v185_v2 = vsel %vm126_vm4, 1.0, %v236_v4  ;;  %vm164_vm8 = vcmp.eq.s32.totalorder %v285_v16, 1  ;;  %s176_s17 = sshll.u32 %s239_s16, 4  ;;  %vm163_vm9 = vcmp.eq.s32.totalorder %v285_v16, 0  ;;  %s177_s17 = int_to_ptr.vmem [resolvable:$true] %s176_s17 }
   0x7   :  { %vm130_vm7 = vmxor %vm126_vm4, %vm238_vm5  ;;  %s210_s19 = scalar_lea.vmem %s177_s17, 16  ;;  %s214_s20 = scalar_lea.vmem %s177_s17, 32 }
   0x8   :  { %p211_p0 = scmp.ne.s32.totalorder %s177_s17, %s210_s19  ;;  %p215_p1 = scmp.lt.s32.totalorder %s177_s17, %s177_s17 }
   0x9   :  { %p216_p2 = scmp.lt.s32.totalorder %s214_s20, %s210_s19 }
   0xa   :  { %v42_v6 = vld [vmem:[#allocation2] sm:$0xff]  ;;  %v43_v9 = vld [vmem:[#allocation2 + $0x8] sm:$0xff] }
   0xb   :  { %v56_v38 = vld [vmem:[#allocation3] sm:$0xff]  ;;  %v57_v42 = vld [vmem:[#allocation3 + $0x8] sm:$0xff]  ;;  %p217_p3 = por %p216_p2, %p215_p1 }
   0xc   :  { %v87_v32 = vld [vmem:[#allocation4] sm:$0xff]  ;;  %v88_v47 = vld [vmem:[#allocation4 + $0x8] sm:$0xff] }
   0xd   :  { %p218_p4 = pnand %p217_p3, %p211_p0 }
  0x1c   :  { %33 = vperm.xlu0 %197, %v274_v5  }
  0x8f   :  { %v45_v7 = vpop.xlane.xlu0 %44 }
  0x90   :  { %v48_v8 = vmax.f32 %v42_v6, %v45_v7 }
  0x92   :  { %v50_v10 = vsub.f32 %v42_v6, %v48_v8  ;;  %85 = vst.msk [vmem:[#allocation2] sm:$0xff] %vm16_vm0, %v48_v8  ;;  %62 = vperm.xlu1 %196, %v48_v8   ;;  %v152_v8 = vsel %vm16_vm0, %v185_v2, 0.0 }
  0x93   :  { %v47_v11 = vpop.xlane.xlu0 %46 }
  0x94   :  { %v49_v12 = vmax.f32 %v43_v9, %v47_v11  ;;  %v52_v35 = vmul.f32 1.442695, %v50_v10 }
  0x96   :  { %v51_v13 = vsub.f32 %v43_v9, %v49_v12  ;;  %86 = vst.msk [vmem:[#allocation2 + $0x8] sm:$0xff] %vm16_vm0, %v49_v12  ;;  %67 = vperm.xlu1 %196, %v49_v12  }
  0x98   :  { %v54_v36 = vmul.f32 1.442695, %v51_v13 }
  0x99   :  { %v102_v54 = vld [vmem:[#allocation2] sm:$0xff] }
  0x9a   :  { %36 = vperm.xlu1 %196, %v282_v14  }
  0x9b   :  { %v34_v17 = vpop.permute.xlu0 %33 }
  0x9c   :  { %vm38_vm1 = vcmp.eq.s32.totalorder %v285_v16, %v34_v17 }
  0x9d   :  { %v40_v19 = vsel %vm38_vm1, 0.9, %v237_v18  ;;  %v103_v60 = vld [vmem:[#allocation2 + $0x8] sm:$0xff] }
  0x9e   :  { %v89_v20 = vmul.f32 %v40_v19, %v23_v0 }
  0xa0   :  { %91 = vadd.xlane.f32.xlu0 %v89_v20 }
 0x111   :  { %v63_v21 = vpop.permute.xlu1 %62 }
 0x112   :  { %v70_v22 = vsub.f32 %v23_v0, %v63_v21 }
 0x114   :  { %v72_v23 = vmul.f32 1.442695, %v70_v22 }
 0x115   :  { %v68_v24 = vpop.permute.xlu1 %67 }
 0x116   :  { %198 = vpow2.f32 %v72_v23  ;;  %v71_v25 = vsub.f32 %v24_v1, %v68_v24 }
 0x118   :  { %v74_v26 = vmul.f32 1.442695, %v71_v25 }
 0x119   :  { %v37_v27 = vpop.permute.xlu1 %36 }
 0x11a   :  { %200 = vpow2.f32 %v74_v26  ;;  %vm39_vm2 = vcmp.eq.s32.totalorder %v285_v16, %v37_v27 }
 0x11b   :  { %v41_v30 = vsel %vm39_vm2, 0.9, %v237_v18  ;;  %202 = vpow2.f32 %v52_v35 }
 0x11c   :  { %v90_v31 = vmul.f32 %v41_v30, %v24_v1  ;;  %204 = vpow2.f32 %v54_v36  ;;  %v184_v1 = vsel %vm125_vm3, 1.0, %v236_v4 }
 0x11d   :  { %v151_v7 = vsel %vm16_vm0, %v184_v1, 0.0 }
 0x11e   :  { %v153_v10 = vadd.f32 %v152_v8, %v151_v7 }
 0x120   :  { %v199_v28 = vpop.eup %198 }
 0x121   :  { %76 = vadd.xlane.f32.xlu1 %v199_v28 }
 0x124   :  { %v201_v29 = vpop.eup %200 }
 0x125   :  { %78 = vadd.xlane.f32.xlu1 %v201_v29  ;;  %v203_v37 = vpop.eup %202 }
 0x126   :  { %v58_v39 = vmul.f32 %v203_v37, %v56_v38  ;;  %v205_v40 = vpop.eup %204 }
 0x127   :  { %v59_v44 = vmul.f32 %v205_v40, %v57_v42 }
 0x129   :  { %93 = vadd.xlane.f32.xlu1 %v90_v31 }
 0x12d   :  { %v92_v33 = vpop.xlane.xlu0 %91 }
 0x12e   :  { %v95_v34 = vadd.f32 %v92_v33, %v87_v32 }
 0x130   :  { %97 = vst.msk [vmem:[#allocation4] sm:$0xff] %vm16_vm0, %v95_v34 }
 0x137   :  { %v112_v55 = vld [vmem:[#allocation4] sm:$0xff] }
 0x1ae   :  { %v77_v41 = vpop.xlane.xlu1 %76 }
 0x1af   :  { %v80_v43 = vadd.f32 %v77_v41, %v58_v39 }
 0x1b1   :  { %83 = vst.msk [vmem:[#allocation3] sm:$0xff] %vm16_vm0, %v80_v43 }
 0x1b2   :  { %v79_v45 = vpop.xlane.xlu1 %78 }
 0x1b3   :  { %v81_v46 = vadd.f32 %v79_v45, %v59_v44 }
 0x1b5   :  { %84 = vst.msk [vmem:[#allocation3 + $0x8] sm:$0xff] %vm16_vm0, %v81_v46 }
 0x1b6   :  { %v94_v48 = vpop.xlane.xlu1 %93 }
 0x1b7   :  { %v96_v49 = vadd.f32 %v94_v48, %v88_v47 }
 0x1b8   :  { %v104_v50 = vld [vmem:[#allocation3] sm:$0xff] }
 0x1b9   :  { %98 = vst.msk [vmem:[#allocation4 + $0x8] sm:$0xff] %vm16_vm0, %v96_v49  ;;  %206 = vlog2.f32 %v104_v50 }
 0x1bc   :  { %v105_v51 = vld [vmem:[#allocation3 + $0x8] sm:$0xff] }
 0x1bd   :  { %208 = vlog2.f32 %v105_v51 }
 0x1c0   :  { %v113_v62 = vld [vmem:[#allocation4 + $0x8] sm:$0xff] }
 0x1c3   :  { %v207_v52 = vpop.eup %206 }
 0x1c4   :  { %v107_v53 = vmul.f32 0.6931472, %v207_v52 }
 0x1c6   :  { %v110_v56 = vadd.f32 %v107_v53, %v102_v54 }
 0x1c7   :  { %v209_v57 = vpop.eup %208 }
 0x1c8   :  { %v109_v58 = vmul.f32 0.6931472, %v209_v57  ;;  %v114_v59 = vsub.f32 %v110_v56, %v112_v55 }
 0x1ca   :  { %v111_v61 = vadd.f32 %v109_v58, %v103_v60  ;;  %v133_v0 = vsel %vm129_vm6, %v114_v59, 0.0 }
 0x1cb   :  { %v135_v5 = vsel %vm16_vm0, %v133_v0, 0.0 }
 0x1cc   :  { %v115_v63 = vsub.f32 %v111_v61, %v113_v62 }
 0x1ce   :  { %v134_v3 = vsel %vm130_vm7, %v115_v63, 0.0 }
 0x1cf   :  { %v136_v6 = vsel %vm16_vm0, %v134_v3, 0.0 }
 0x1d0   :  { %v137_v9 = vadd.f32 %v136_v6, %v135_v5 }
 0x1d2   :  { %138 = vadd.xlane.f32.xlu1 %v137_v9 }
 0x1d6   :  { %154 = vadd.xlane.f32.xlu1 %v153_v10 }
 0x25f   :  { %v139_v11 = vpop.xlane.xlu1 %138 }
 0x260   :  { %v140_v12 = vrot.slane %v139_v11, 4 }
 0x262   :  { %v141_v13 = vadd.f32 %v140_v12, %v139_v11 }
 0x263   :  { %v155_v14 = vpop.xlane.xlu1 %154 }
 0x264   :  { %v142_v15 = vrot.slane %v141_v13, 2  ;;  %v156_v17 = vrot.slane %v155_v14, 4 }
 0x266   :  { %v157_v4 = vadd.f32 %v156_v17, %v155_v14  ;;  %v143_v18 = vadd.f32 %v142_v15, %v141_v13 }
 0x268   :  { %v158_v19 = vrot.slane %v157_v4, 2  ;;  %v144_v20 = vrot.slane %v143_v18, 1 }
 0x26a   :  { %v159_v21 = vadd.f32 %v158_v19, %v157_v4  ;;  %v145_v22 = vadd.f32 %v144_v20, %v143_v18 }
 0x26c   :  { %186 = vpush %v145_v22  ;;  %v160_v23 = vrot.slane %v159_v21, 1 }
 0x26e   :  { %v161_v24 = vadd.f32 %v160_v23, %v159_v21 }
 0x270   :  { %188 = vpush %v161_v24 }
 0x29d   :  { %s187_s0 = spop %186 }
 0x29e   :  { %v167_v26 = vstv %s187_s0 }
 0x2a1   :  { %s189_s18 = spop %188 }
 0x2a2   :  { %v165_v25 = vstv %s189_s18 }
 0x2a3   :  { %v166_v27 = vsel %vm164_vm8, %v165_v25, 0.0 }
 0x2a4   :  { %v168_v28 = vsel %vm163_vm9, %v167_v26, %v166_v27 }
 0x2a5   :  { %169 = vst [vmem:[#allocation5] sm:$0x1] %v168_v28 }
 0x2a6   :  { %221 = shalt.err (!%p218_p4)
}
 0x2a7   :  { %s222_s23 = scalar_lea.hbm %s317_s2, 16 }
 0x2a8   :  { %p223_p5 = scmp.ne.s32.totalorder %s317_s2, %s222_s23  ;;  %p226_p6 = scmp.lt.u32.totalorder %s222_s23, %s317_s2 }
 0x2aa   :  { %p228_p7 = pnand %p226_p6, %p223_p5 }
 0x2ac   :  { %231 = shalt.err (!%p228_p7)
}
 0x2ad   :  { %179 = dma.vmem_to_hbm [thread:$0]  %s177_s17, 16, %s317_s2, [#allocation6]  }
 0x2ae   :  { %232 = dma.done.wait [#allocation6], 16  }
 0x2af   :  { %233 = vsyncadd [#allocation6], 4294967280 }
 0x2b0   :  { %183 = vsyncpa [#allocation6], 1 }

</bundles_post_ra>
